<compile_context>
chip_gen: v7x
topology: tpu7x:2x2x1
jax: 0.10.0
libtpu: 0.0.40
codegen_flags: <defaults>
</compile_context>

<pallas_src>
import functools
import math

import jax
import jax.numpy as jnp
from jax import lax
from jax.experimental import pallas as pl
from jax.experimental.pallas import tpu as pltpu


def _attn_kernel(seed_ref, q_ref, k_ref, v_ref, o_ref, *, inv_scale, dropout_p, bt):
    # Blocks are (Bt, L, D); keep native dtype, accumulate matmuls in f32.
    q = q_ref[...]
    k = k_ref[...]
    v = v_ref[...]

    # Fold the 1/p.i1 scale into q (Lq*D elements instead of Lq*Lk scores).
    q = q * jnp.asarray(inv_scale, q.dtype)

    # scores = q @ k^T without materializing a transpose: contract last dims,
    # batched over dim 0.
    s = lax.dot_general(
        q, k,
        dimension_numbers=(((2,), (2,)), ((0,), (0,))),
        preferred_element_type=jnp.float32,
    )  # (Bt, Lq, Lk) f32

    # Numerically-stable softmax numerator; row normalization is deferred to
    # after the second matmul (it is a per-row scalar).
    m = jnp.max(s, axis=-1, keepdims=True)
    e = jnp.exp(s - m)                           # (Bt, Lq, Lk)
    denom = jnp.sum(e, axis=-1, keepdims=True)   # (Bt, Lq, 1)

    if dropout_p > 0.0:
        keep_prob = 1.0 - dropout_p
        # Counter-based hash RNG using plain VPU integer ops (works both on
        # real TPUs and in interpret mode; pltpu.prng_* has no CPU lowering).
        # One independent stream per (global batch, row, col) element.
        shape = e.shape
        seed_u = seed_ref[0].astype(jnp.uint32)
        b_off = (pl.program_id(0) * bt).astype(jnp.uint32)
        bi = lax.broadcasted_iota(jnp.int32, shape, 0).astype(jnp.uint32) + b_off
        ri = lax.broadcasted_iota(jnp.int32, shape, 1).astype(jnp.uint32)
        ci = lax.broadcasted_iota(jnp.int32, shape, 2).astype(jnp.uint32)
        x = (seed_u * jnp.uint32(0x9E3779B1)) \
            ^ (bi * jnp.uint32(0x85EBCA77)) \
            ^ (ri * jnp.uint32(0xC2B2AE3D)) \
            ^ (ci * jnp.uint32(0x27D4EB2F))
        # splitmix32-style finalizer
        x = x ^ (x >> 16)
        x = x * jnp.uint32(0x7FEB352D)
        x = x ^ (x >> 15)
        x = x * jnp.uint32(0x846CA68B)
        x = x ^ (x >> 16)
        # Integer-threshold compare: keep iff bits < keep_prob * 2^32.
        # (keep_prob < 1.0 is guaranteed by the dropout_p > 0 guard.)
        threshold = jnp.uint32(min(int(keep_prob * 4294967296.0), 4294967295))
        e = jnp.where(x < threshold, e, 0.0)
        post_scale = 1.0 / keep_prob
    else:
        post_scale = 1.0

    # out = (masked softmax numerator) @ v, then one per-row rescale that
    # folds both the softmax denominator and the dropout 1/keep_prob.
    unnorm = lax.dot_general(
        e.astype(v.dtype), v,
        dimension_numbers=(((2,), (1,)), ((0,), (0,))),
        preferred_element_type=jnp.float32,
    )  # (Bt, Lq, Dv) f32
    inv = jnp.asarray(post_scale, jnp.float32) / denom  # (Bt, Lq, 1)
    o_ref[...] = (unnorm * inv).astype(o_ref.dtype)


def sdpa_pallas(q, k, v, *, scale, dropout_p=0.0, seed=0, batch_block=None):
    """q: (B, Lq, D), k: (B, Lk, D), v: (B, Lk, Dv) -> (B, Lq, Dv)."""
    B, Lq, D = q.shape
    _, Lk, _ = k.shape
    Dv = v.shape[-1]

    if batch_block is None:
        # Largest divisor of B up to 8: amortize per-grid-step overhead while
        # keeping the VMEM footprint tiny (well under the scoped limit even
        # on v7x).
        batch_block = next(bt for bt in (8, 4, 2, 1) if B % bt == 0)
    bt = batch_block
    assert B % bt == 0, "batch_block must divide the batch size"

    kernel = functools.partial(
        _attn_kernel,
        inv_scale=1.0 / float(scale),
        dropout_p=float(dropout_p),
        bt=bt,
    )
    seed_arr = jnp.asarray([seed], dtype=jnp.int32)

    return pl.pallas_call(
        kernel,
        out_shape=jax.ShapeDtypeStruct((B, Lq, Dv), q.dtype),
        grid_spec=pltpu.PrefetchScalarGridSpec(
            num_scalar_prefetch=1,
            grid=(B // bt,),
            in_specs=[
                pl.BlockSpec((bt, Lq, D), lambda b, seed: (b, 0, 0)),
                pl.BlockSpec((bt, Lk, D), lambda b, seed: (b, 0, 0)),
                pl.BlockSpec((bt, Lk, Dv), lambda b, seed: (b, 0, 0)),
            ],
            out_specs=pl.BlockSpec((bt, Lq, Dv), lambda b, seed: (b, 0, 0)),
        ),
        compiler_params=pltpu.CompilerParams(
            # Batch steps are independent -> shard across v7x's 2 TensorCores.
            dimension_semantics=("parallel",),
        ),
    )(seed_arr, q, k, v)


def sdpa_reference(q, k, v, *, scale):
    # Pure-JAX reference (dropout disabled).
    s = jnp.einsum("bqd,bkd->bqk", q, k) / scale
    p = jax.nn.softmax(s, axis=-1)
    return jnp.einsum("bqk,bkv->bqv", p, v)


if __name__ == "__main__":
    # Parameters standing in for Param(): i1 = sqrt(d_k), d0 = dropout prob.
    D = 20
    P_I1 = math.sqrt(D)   # divisor applied to the attention scores
    P_D0 = 0.1            # dropout probability

    key = jax.random.PRNGKey(0)
    kq, kk, kv = jax.random.split(key, 3)
    q = jax.random.normal(kq, (1, 40, D), dtype=jnp.float32)
    k = jax.random.normal(kk, (1, 60, D), dtype=jnp.float32)
    v = jax.random.normal(kv, (1, 60, 5), dtype=jnp.float32)

    # 1) Correctness with dropout disabled (deterministic path).
    out_nodrop = sdpa_pallas(q, k, v, scale=P_I1, dropout_p=0.0)
    jax.block_until_ready(out_nodrop)
    ref = sdpa_reference(q, k, v, scale=P_I1)
    assert out_nodrop.shape == (1, 40, 5)
    assert jnp.allclose(out_nodrop, ref, atol=1e-4, rtol=1e-4)

    # 2) Batched path (multiple batch elements per grid step).
    kq2, kk2, kv2 = jax.random.split(jax.random.PRNGKey(1), 3)
    qb = jax.random.normal(kq2, (4, 40, D), dtype=jnp.float32)
    kb = jax.random.normal(kk2, (4, 60, D), dtype=jnp.float32)
    vb = jax.random.normal(kv2, (4, 60, 5), dtype=jnp.float32)
    outb = sdpa_pallas(qb, kb, vb, scale=P_I1, dropout_p=0.0)
    jax.block_until_ready(outb)
    refb = sdpa_reference(qb, kb, vb, scale=P_I1)
    assert outb.shape == (4, 40, 5)
    assert jnp.allclose(outb, refb, atol=1e-4, rtol=1e-4)

    # 3) Full forward pass with dropout (p = d0), as in the PyTorch module.
    out = sdpa_pallas(q, k, v, scale=P_I1, dropout_p=P_D0, seed=1234)
    jax.block_until_ready(out)
    assert out.shape == (1, 40, 5)
    assert bool(jnp.all(jnp.isfinite(out)))

    print("KERNEL_OK")
</pallas_src>

<mosaic_0001>
module attributes {stable_mosaic.version = 11 : i64} {
  func.func @_attn_kernel(%arg0: i32, %arg1: memref<1xi32, #tpu.memory_space<smem>>, %arg2: memref<1x40x20xf32, #tpu.memory_space<vmem>>, %arg3: memref<1x60x20xf32, #tpu.memory_space<vmem>>, %arg4: memref<1x60x5xf32, #tpu.memory_space<vmem>>, %arg5: memref<1x40x5xf32, #tpu.memory_space<vmem>>) attributes {dimension_semantics = [#tpu.dimension_semantics<parallel>], iteration_bounds = array<i64: 1>, scalar_prefetch = 1 : i64, scratch_operands = 0 : i64, tpu.core_type = #tpu.core_type<tc>, window_params = [{transform_indices = @transform_0, window_bounds = array<i64: 1, 40, 20>}, {transform_indices = @transform_1, window_bounds = array<i64: 1, 60, 20>}, {transform_indices = @transform_2, window_bounds = array<i64: 1, 60, 5>}, {transform_indices = @transform_3, window_bounds = array<i64: 1, 40, 5>}]} {
    %c0 = arith.constant 0 : index
    %c0_0 = arith.constant 0 : index
    %c0_1 = arith.constant 0 : index
    %0 = vector.load %arg2[%c0, %c0_0, %c0_1] : memref<1x40x20xf32, #tpu.memory_space<vmem>>, vector<1x40x20xf32>
    %c0_2 = arith.constant 0 : index
    %c0_3 = arith.constant 0 : index
    %c0_4 = arith.constant 0 : index
    %1 = vector.load %arg3[%c0_2, %c0_3, %c0_4] : memref<1x60x20xf32, #tpu.memory_space<vmem>>, vector<1x60x20xf32>
    %c0_5 = arith.constant 0 : index
    %c0_6 = arith.constant 0 : index
    %c0_7 = arith.constant 0 : index
    %2 = vector.load %arg4[%c0_5, %c0_6, %c0_7] : memref<1x60x5xf32, #tpu.memory_space<vmem>>, vector<1x60x5xf32>
    %cst = arith.constant 0.223606795 : f32
    %3 = vector.broadcast %cst : f32 to vector<1x40x20xf32>
    %4 = arith.mulf %0, %3 : vector<1x40x20xf32>
    %cst_8 = arith.constant dense<0.000000e+00> : vector<1x40x60xf32>
    %5 = tpu.matmul %4, %1, %cst_8 {dimension_numbers = #tpu.dot_dimension_numbers<[2], [2], [1], [1], [0, 0, 0, 1, 1, 1], [0], [0]>} : vector<1x40x20xf32>, vector<1x60x20xf32>, vector<1x40x60xf32> -> vector<1x40x60xf32>
    %cst_9 = arith.constant dense<0xFF800000> : vector<1x40xf32>
    %6 = vector.multi_reduction <maximumf>, %5, %cst_9 [2] : vector<1x40x60xf32> to vector<1x40xf32>
    %7 = vector.shape_cast %6 : vector<1x40xf32> to vector<1x40x1xf32>
    %8 = vector.broadcast %7 : vector<1x40x1xf32> to vector<1x40x60xf32>
    %9 = arith.subf %5, %8 : vector<1x40x60xf32>
    %10 = math.exp %9 : vector<1x40x60xf32>
    %cst_10 = arith.constant dense<0.000000e+00> : vector<1x40xf32>
    %11 = vector.multi_reduction <add>, %10, %cst_10 [2] : vector<1x40x60xf32> to vector<1x40xf32>
    %12 = vector.shape_cast %11 : vector<1x40xf32> to vector<1x40x1xf32>
    %cst_11 = arith.constant dense<0.000000e+00> : vector<1x40x5xf32>
    %13 = tpu.matmul %10, %2, %cst_11 {dimension_numbers = #tpu.dot_dimension_numbers<[2], [1], [1], [2], [0, 0, 0, 1, 1, 2], [0], [0]>} : vector<1x40x60xf32>, vector<1x60x5xf32>, vector<1x40x5xf32> -> vector<1x40x5xf32>
    %cst_12 = arith.constant 1.000000e+00 : f32
    %14 = vector.broadcast %cst_12 : f32 to vector<1x40x1xf32>
    %15 = arith.divf %14, %12 : vector<1x40x1xf32>
    %16 = vector.broadcast %15 : vector<1x40x1xf32> to vector<1x40x5xf32>
    %17 = arith.mulf %13, %16 : vector<1x40x5xf32>
    %c0_13 = arith.constant 0 : index
    %c0_14 = arith.constant 0 : index
    %c0_15 = arith.constant 0 : index
    %18 = vector.load %arg5[%c0_13, %c0_14, %c0_15] : memref<1x40x5xf32, #tpu.memory_space<vmem>>, vector<1x40x5xf32>
    tpu.vector_store %arg5[%c0_13, %c0_14, %c0_15], %17 {strides = array<i32>} : memref<1x40x5xf32, #tpu.memory_space<vmem>>, vector<1x40x5xf32>,
    return
  }
  func.func @transform_0(%arg0: i32, %arg1: memref<1xi32, #tpu.memory_space<smem>>) -> (i32, i32, i32) {
    %c0_i32 = arith.constant 0 : i32
    %c0_i32_0 = arith.constant 0 : i32
    %c0_i32_1 = arith.constant 0 : i32
    return %arg0, %c0_i32, %c0_i32_0 : i32, i32, i32
  }
  func.func @transform_1(%arg0: i32, %arg1: memref<1xi32, #tpu.memory_space<smem>>) -> (i32, i32, i32) {
    %c0_i32 = arith.constant 0 : i32
    %c0_i32_0 = arith.constant 0 : i32
    %c0_i32_1 = arith.constant 0 : i32
    return %arg0, %c0_i32, %c0_i32_0 : i32, i32, i32
  }
  func.func @transform_2(%arg0: i32, %arg1: memref<1xi32, #tpu.memory_space<smem>>) -> (i32, i32, i32) {
    %c0_i32 = arith.constant 0 : i32
    %c0_i32_0 = arith.constant 0 : i32
    %c0_i32_1 = arith.constant 0 : i32
    return %arg0, %c0_i32, %c0_i32_0 : i32, i32, i32
  }
  func.func @transform_3(%arg0: i32, %arg1: memref<1xi32, #tpu.memory_space<smem>>) -> (i32, i32, i32) {
    %c0_i32 = arith.constant 0 : i32
    %c0_i32_0 = arith.constant 0 : i32
    %c0_i32_1 = arith.constant 0 : i32
    return %arg0, %c0_i32, %c0_i32_0 : i32, i32, i32
  }
}

</mosaic_0001>

<bundles_post_ra>
// kernel: tpu_custom_call.1
= control target key start
LH: loop header
LB: loop body
LE: loop exit
PB: predicated region body
PF: predicated region fallthrough
CT: control target
= control target key end

     0   :  { %vm42_vm0 = vcmask 162816   ;;  %v512_v0 = vmov 0.0|0.0   ;;  %vm513_vm2 = vmmov 0   ;;  %v514_v4 = vmov 0.0   ;;  %s686_s0 = inlined_call_operand.<no memory space> [shape: s32[1], index: 0, kind: input, shape index: {}]   ;;  %s687_s2 = inlined_call_operand.vmem [shape: f32[1,60,20], index: 2, kind: input, shape index: {}]   ;;  %s688_s1 = inlined_call_operand.vmem [shape: f32[1,40,20], index: 1, kind: input, shape index: {}]   ;;  %s689_s3 = inlined_call_operand.vmem [shape: f32[1,60,5], index: 3, kind: input, shape index: {}]   ;;  %s690_s4 = inlined_call_operand.vmem [shape: f32[1,40,5], index: 4, kind: output, shape index: {}]  }
   0x1   :  { %459 = vmatprep.subr.bf16.mxu0 %v512_v0  ;;  %v21_v1 = vld [vmem:[%s687_s2] sm:$0xff]  ;;  %v22_v2 = vld [vmem:[%s687_s2 + $0x8] sm:$0xff]  ;;  %vm550_vm1 = vmpackc.low %vm42_vm0, %vm42_vm0  ;;  %413 = vmatprep.mubr.msk.f32.mxu0 %vm513_vm2, %v514_v4  ;;  %vm172_vm3 = vcmask 490496   ;;  %vm233_vm4 = vcmask 1043456   ;;  %vm515_vm5 = vmmov 1   ;;  %vm342_vm7 = vcmask 39936  }
   0x2   :  { %v460_v5 = vpack.c.bf16 %v22_v2, %v21_v1  ;;  %475 = vmatprep.subr.bf16.mxu1 %v512_v0  ;;  %444 = vmatprep.mubr.msk.f32.mxu1 %vm513_vm2, %v514_v4  ;;  %v23_v6 = vld [vmem:[%s687_s2 + $0x10] sm:$0xff]  ;;  %v24_v7 = vld [vmem:[%s687_s2 + $0x18] sm:$0xff]  ;;  %v25_v9 = vld [vmem:[%s687_s2 + $0x20] sm:$0xff] }
   0x3   :  { %v464_v8 = vpack.c.bf16 %v24_v7, %v23_v6  ;;  %v26_v10 = vld [vmem:[%s687_s2 + $0x28] sm:$0xff]  ;;  %v27_v12 = vld [vmem:[%s687_s2 + $0x30] sm:$0xff]  ;;  %v28_v13 = vld [vmem:[%s687_s2 + $0x38] sm:$0xf] }
   0x4   :  { %462 = vmatpush3.bf16.xpose.msk.msra.mxu0 %vm550_vm1, %v460_v5  ;;  %v468_v11 = vpack.c.bf16 %v26_v10, %v25_v9  ;;  %v472_v14 = vpack.c.bf16 %v28_v13, %v27_v12  ;;  %v16_v15 = vld [vmem:[%s688_s1] sm:$0xff]  ;;  %v17_v17 = vld [vmem:[%s688_s1 + $0x8] sm:$0xff]  ;;  %v18_v19 = vld [vmem:[%s688_s1 + $0x10] sm:$0xff] }
   0x5   :  { %463 = vmatprep.subr.bf16.mxu0 %v512_v0  ;;  %v37_v16 = vmul.f32 0.2236068, %v16_v15  ;;  %v38_v18 = vmul.f32 0.2236068, %v17_v17  ;;  %v39_v20 = vmul.f32 0.2236068, %v18_v19  ;;  %vm486_vm6 = vmpackc.low %vm233_vm4, %vm515_vm5 }
   0x6   :  { %v19_v21 = vld [vmem:[%s688_s1 + $0x18] sm:$0xff]  ;;  %v20_v23 = vld [vmem:[%s688_s1 + $0x20] sm:$0xff]  ;;  %v30_v38 = vld [vmem:[%s689_s3 + $0x8] sm:$0xff] }
   0x7   :  { %v40_v22 = vmul.f32 0.2236068, %v19_v21  ;;  %v41_v24 = vmul.f32 0.2236068, %v20_v23  ;;  %v29_v37 = vld [vmem:[%s689_s3] sm:$0xff]  ;;  %v31_v43 = vld [vmem:[%s689_s3 + $0x10] sm:$0xff] }
   0x8   :  { %v476_v39 = vpack.c.bf16 %v30_v38, %v29_v37  ;;  %v32_v44 = vld [vmem:[%s689_s3 + $0x18] sm:$0xff]  ;;  %v33_v46 = vld [vmem:[%s689_s3 + $0x20] sm:$0xff]  ;;  %v34_v47 = vld [vmem:[%s689_s3 + $0x28] sm:$0xff] }
   0x9   :  { %v479_v45 = vpack.c.bf16 %v32_v44, %v31_v43  ;;  %v482_v48 = vpack.c.bf16 %v34_v47, %v33_v46  ;;  %v35_v49 = vld [vmem:[%s689_s3 + $0x30] sm:$0xff]  ;;  %v36_v50 = vld [vmem:[%s689_s3 + $0x38] sm:$0xf] }
   0xa   :  { %477 = vmatpush3.bf16.msra.mxu1 %v476_v39  ;;  %v485_v51 = vpack.c.bf16 %v36_v50, %v35_v49 }
   0xb   :  { %478 = vmatprep.subr.bf16.mxu1 %v512_v0 }
   0xc   :  { %466 = vmatpush3.bf16.xpose.msk.msra.mxu0 %vm550_vm1, %v464_v8 }
   0xd   :  { %467 = vmatprep.subr.bf16.mxu0 %v512_v0 }
   0xe   :  { %480 = vmatpush3.bf16.msra.mxu1 %v479_v45 }
   0xf   :  { %481 = vmatprep.subr.bf16.mxu1 %v512_v0 }
  0x12   :  { %483 = vmatpush3.bf16.msra.mxu1 %v482_v48 }
  0x13   :  { %484 = vmatprep.subr.bf16.mxu1 %v512_v0 }
  0x14   :  { %470 = vmatpush3.bf16.xpose.msk.msra.mxu0 %vm550_vm1, %v468_v11 }
  0x15   :  { %471 = vmatprep.subr.bf16.mxu0 %v512_v0 }
  0x16   :  { %487 = vmatpush3.bf16.msk.msra.mxu1 %vm486_vm6, %v485_v51 }
  0x1c   :  { %474 = vmatpush3.bf16.xpose.msk.msra.mxu0 %vm550_vm1, %v472_v14 }
  0x23   :  { %414 = vmatmul.mubr.msk.f32.vlgmr.msra.gmra.mrb[0].mxu0 %vm42_vm0, %v37_v16 }
  0x24   :  { %416 = vmatprep.mubr.msk.f32.mxu0 %vm513_vm2, %v514_v4 }
  0x27   :  { %417 = vmatmul.mubr.msk.f32.gmra.mrb[2].mxu0 %vm42_vm0, %v38_v18 }
  0x28   :  { %419 = vmatprep.mubr.msk.f32.mxu0 %vm513_vm2, %v514_v4 }
  0x2b   :  { %420 = vmatmul.mubr.msk.f32.gmra.mrb[4].mxu0 %vm42_vm0, %v39_v20 }
  0x2c   :  { %422 = vmatprep.mubr.msk.f32.mxu0 %vm513_vm2, %v514_v4 }
  0x2f   :  { %423 = vmatmul.mubr.msk.f32.gmra.mrb[6].mxu0 %vm42_vm0, %v40_v22 }
  0x30   :  { %425 = vmatprep.mubr.msk.f32.mxu0 %vm513_vm2, %v514_v4 }
  0x33   :  { %426 = vmatmul.mubr.msk.f32.gmra.mrb[8].mxu0 %vm42_vm0, %v41_v24 }
  0xf6   :  { %v148_v25 = vpop.f32.mrb[0].mxu0 }
  0xf7   :  { %v415_v26 = vpop.f32.mrb[1].mxu0  ;;  %v173_v27 = vsel %vm172_vm3, %v148_v25, -inf }
  0xf8   :  { %174 = vmax.xlane.f32.xlu0 %v173_v27 }
  0xfa   :  { %v153_v28 = vpop.f32.mrb[2].mxu0 }
  0xfb   :  { %v418_v29 = vpop.f32.mrb[3].mxu0  ;;  %v176_v30 = vsel %vm172_vm3, %v153_v28, -inf }
  0xfc   :  { %177 = vmax.xlane.f32.xlu0 %v176_v30 }
  0xfe   :  { %v158_v31 = vpop.f32.mrb[4].mxu0 }
  0xff   :  { %v421_v32 = vpop.f32.mrb[5].mxu0  ;;  %v179_v33 = vsel %vm172_vm3, %v158_v31, -inf }
 0x100   :  { %180 = vmax.xlane.f32.xlu1 %v179_v33 }
 0x102   :  { %v163_v34 = vpop.f32.mrb[6].mxu0 }
 0x103   :  { %v424_v35 = vpop.f32.mrb[7].mxu0  ;;  %v182_v36 = vsel %vm172_vm3, %v163_v34, -inf }
 0x104   :  { %183 = vmax.xlane.f32.xlu1 %v182_v36 }
 0x106   :  { %v168_v40 = vpop.f32.mrb[8].mxu0 }
 0x107   :  { %v427_v41 = vpop.f32.mrb[9].mxu0  ;;  %v185_v42 = vsel %vm172_vm3, %v168_v40, -inf }
 0x108   :  { %186 = vmax.xlane.f32.xlu0 %v185_v42 }
 0x185   :  { %v175_v52 = vpop.xlane.xlu0 %174 }
 0x186   :  { %v188_v53 = vsub.f32 %v148_v25, %v175_v52 }
 0x188   :  { %v193_v54 = vmul.f32 1.442695, %v188_v53 }
 0x189   :  { %v178_v55 = vpop.xlane.xlu0 %177 }
 0x18a   :  { %492 = vpow2.f32 %v193_v54  ;;  %v189_v56 = vsub.f32 %v153_v28, %v178_v55 }
 0x18c   :  { %v195_v57 = vmul.f32 1.442695, %v189_v56 }
 0x18d   :  { %v181_v58 = vpop.xlane.xlu1 %180 }
 0x18e   :  { %494 = vpow2.f32 %v195_v57  ;;  %v190_v59 = vsub.f32 %v158_v31, %v181_v58 }
 0x190   :  { %v197_v60 = vmul.f32 1.442695, %v190_v59 }
 0x191   :  { %v184_v61 = vpop.xlane.xlu1 %183 }
 0x192   :  { %496 = vpow2.f32 %v197_v60  ;;  %v191_v62 = vsub.f32 %v163_v34, %v184_v61 }
 0x194   :  { %v493_v63 = vpop.eup %492  ;;  %v199_v0 = vmul.f32 1.442695, %v191_v62 }
 0x195   :  { %445 = vmatmul.mubr.msk.f32.vlgmr.msra.gmra.mrb[0].mxu1 %vm172_vm3, %v493_v63  ;;  %v187_v1 = vpop.xlane.xlu0 %186  ;;  %v203_v2 = vsel %vm172_vm3, %v493_v63, 0.0 }
 0x196   :  { %498 = vpow2.f32 %v199_v0  ;;  %v192_v3 = vsub.f32 %v168_v40, %v187_v1  ;;  %204 = vadd.xlane.f32.xlu1 %v203_v2  ;;  %447 = vmatprep.mubr.msk.f32.mxu1 %vm513_vm2, %v514_v4 }
 0x198   :  { %v495_v5 = vpop.eup %494  ;;  %v201_v6 = vmul.f32 1.442695, %v192_v3 }
 0x199   :  { %448 = vmatmul.mubr.msk.f32.gmra.mrb[2].mxu1 %vm172_vm3, %v495_v5  ;;  %v206_v7 = vsel %vm172_vm3, %v495_v5, 0.0 }
 0x19a   :  { %500 = vpow2.f32 %v201_v6  ;;  %207 = vadd.xlane.f32.xlu0 %v206_v7  ;;  %450 = vmatprep.mubr.msk.f32.mxu1 %vm513_vm2, %v514_v4 }
 0x19c   :  { %v497_v8 = vpop.eup %496 }
 0x19d   :  { %451 = vmatmul.mubr.msk.f32.gmra.mrb[4].mxu1 %vm172_vm3, %v497_v8  ;;  %v209_v9 = vsel %vm172_vm3, %v497_v8, 0.0 }
 0x19e   :  { %210 = vadd.xlane.f32.xlu1 %v209_v9  ;;  %453 = vmatprep.mubr.msk.f32.mxu1 %vm513_vm2, %v514_v4 }
 0x1a0   :  { %v499_v10 = vpop.eup %498 }
 0x1a1   :  { %454 = vmatmul.mubr.msk.f32.gmra.mrb[6].mxu1 %vm172_vm3, %v499_v10  ;;  %v212_v11 = vsel %vm172_vm3, %v499_v10, 0.0 }
 0x1a2   :  { %213 = vadd.xlane.f32.xlu0 %v212_v11  ;;  %456 = vmatprep.mubr.msk.f32.mxu1 %vm513_vm2, %v514_v4 }
 0x1a4   :  { %v501_v12 = vpop.eup %500 }
 0x1a5   :  { %457 = vmatmul.mubr.msk.f32.gmra.mrb[8].mxu1 %vm172_vm3, %v501_v12  ;;  %v215_v13 = vsel %vm172_vm3, %v501_v12, 0.0 }
 0x1a6   :  { %216 = vadd.xlane.f32.xlu1 %v215_v13 }
 0x223   :  { %v205_v14 = vpop.xlane.xlu1 %204 }
 0x224   :  { %502 = vrcp.f32 %v205_v14 }
 0x227   :  { %v208_v15 = vpop.xlane.xlu0 %207 }
 0x228   :  { %504 = vrcp.f32 %v208_v15 }
 0x22b   :  { %v211_v16 = vpop.xlane.xlu1 %210 }
 0x22c   :  { %506 = vrcp.f32 %v211_v16 }
 0x22e   :  { %v503_v18 = vpop.eup %502 }
 0x22f   :  { %v214_v17 = vpop.xlane.xlu0 %213 }
 0x230   :  { %508 = vrcp.f32 %v214_v17 }
 0x232   :  { %v505_v22 = vpop.eup %504 }
 0x233   :  { %v217_v4 = vpop.xlane.xlu1 %216 }
 0x234   :  { %510 = vrcp.f32 %v217_v4 }
 0x236   :  { %v507_v26 = vpop.eup %506 }
 0x23a   :  { %v509_v30 = vpop.eup %508 }
 0x23e   :  { %v511_v34 = vpop.eup %510 }
 0x268   :  { %v303_v19 = vpop.f32.mrb[0].mxu1 }
 0x269   :  { %v337_v20 = vmul.f32 %v503_v18, %v303_v19  ;;  %v446_v21 = vpop.f32.mrb[1].mxu1 }
 0x26b   :  { %343 = vst.msk [vmem:[%s690_s4] sm:$0xff] %vm342_vm7, %v337_v20 }
 0x26c   :  { %v308_v23 = vpop.f32.mrb[2].mxu1 }
 0x26d   :  { %v338_v24 = vmul.f32 %v505_v22, %v308_v23  ;;  %v449_v25 = vpop.f32.mrb[3].mxu1 }
 0x26f   :  { %344 = vst.msk [vmem:[%s690_s4 + $0x8] sm:$0xff] %vm342_vm7, %v338_v24 }
 0x270   :  { %v313_v27 = vpop.f32.mrb[4].mxu1 }
 0x271   :  { %v339_v28 = vmul.f32 %v507_v26, %v313_v27  ;;  %v452_v29 = vpop.f32.mrb[5].mxu1 }
 0x273   :  { %345 = vst.msk [vmem:[%s690_s4 + $0x10] sm:$0xff] %vm342_vm7, %v339_v28 }
 0x274   :  { %v318_v31 = vpop.f32.mrb[6].mxu1 }
 0x275   :  { %v340_v32 = vmul.f32 %v509_v30, %v318_v31  ;;  %v455_v33 = vpop.f32.mrb[7].mxu1 }
 0x277   :  { %346 = vst.msk [vmem:[%s690_s4 + $0x18] sm:$0xff] %vm342_vm7, %v340_v32 }
 0x278   :  { %v323_v35 = vpop.f32.mrb[8].mxu1 }
 0x279   :  { %v341_v36 = vmul.f32 %v511_v34, %v323_v35  ;;  %v458_v37 = vpop.f32.mrb[9].mxu1 }
 0x27b   :  { %347 = vst.msk [vmem:[%s690_s4 + $0x20] sm:$0xff] %vm342_vm7, %v341_v36 }

</bundles_post_ra>
